<compile_context>
chip_gen: v7x
topology: tpu7x:2x2x1
jax: 0.10.0
libtpu: 0.0.40
codegen_flags: <defaults>
</compile_context>

<pallas_src>
import functools

import jax
import jax.numpy as jnp
from jax.experimental import pallas as pl
from jax.experimental.pallas import tpu as pltpu


def _round_up(x, m):
    return ((x + m - 1) // m) * m


def _elementwise_dtype_for_device():
    """bf16 elementwise on chips with bf16 VPU/EUP (v6e/v7x); f32 otherwise."""
    try:
        kind = jax.devices()[0].device_kind.lower()
    except Exception:
        return jnp.float32
    if "v6" in kind or "v7" in kind:
        return jnp.bfloat16
    return jnp.float32


def _gated_attn_kernel_c1(x_ref, wab_ref, bab_ref, wc_ref, bc_ref, o_ref, *,
                          ew_dtype):
    """n_class == 1: fused [L,2Dp] MXU matmul + VPU gating + XLU lane reduce."""
    Dp = wc_ref.shape[1]
    # Per-tile cast to bf16 (MXU operand); accumulate in f32.
    ab = jnp.dot(x_ref[...].astype(jnp.bfloat16), wab_ref[...],
                 preferred_element_type=jnp.float32) + bab_ref[...]
    # Slices are lane-tile aligned because Dp % 128 == 0 (no relayout copy).
    a = jnp.tanh(ab[:, :Dp].astype(ew_dtype))
    b = jax.nn.sigmoid(ab[:, Dp:].astype(ew_dtype))
    gated = a * b                                               # [TN, Dp]
    # attention_c (D -> 1): elementwise mul (VPU) + lane reduce (XLU) in f32,
    # bias folded in from the SMEM scalar.  Avoids a 1-column MXU pass.
    w = wc_ref[...].astype(ew_dtype)                            # [1, Dp]
    A = jnp.sum((gated * w).astype(jnp.float32), axis=-1, keepdims=True)
    o_ref[...] = (A + bc_ref[0, 0]).astype(o_ref.dtype)         # [TN, 1]


def _gated_attn_kernel_mxu(x_ref, wab_ref, bab_ref, wc_ref, bc_ref, o_ref, *,
                           ew_dtype):
    """General n_class: final D->C projection on the MXU."""
    Dp = wc_ref.shape[0]
    ab = jnp.dot(x_ref[...].astype(jnp.bfloat16), wab_ref[...],
                 preferred_element_type=jnp.float32) + bab_ref[...]
    a = jnp.tanh(ab[:, :Dp].astype(ew_dtype))
    b = jax.nn.sigmoid(ab[:, Dp:].astype(ew_dtype))
    gated = (a * b).astype(wc_ref.dtype)                        # bf16 MXU operand
    o_ref[...] = (jnp.dot(gated, wc_ref[...],
                          preferred_element_type=jnp.float32)
                  + bc_ref[...]).astype(o_ref.dtype)


def fuse_params(wa, ba, wb, bb, wc, bc):
    """One-time parameter prep (hoisted out of the per-call forward).

    Fuses the two L->D projections into a single [L, 2*Dp] bf16 weight, pads D
    up to a multiple of 128 (padded wc rows/cols are zero => zero contribution)
    and casts everything once, so the pallas_call is the only per-call HBM
    consumer.
    """
    L, D = wa.shape
    C = wc.shape[1]
    Dp = _round_up(D, 128)
    pad = Dp - D

    wa_p = jnp.pad(wa, ((0, 0), (0, pad)))
    wb_p = jnp.pad(wb, ((0, 0), (0, pad)))
    ba_p = jnp.pad(ba.reshape(1, D), ((0, 0), (0, pad)))
    bb_p = jnp.pad(bb.reshape(1, D), ((0, 0), (0, pad)))

    wab = jnp.concatenate([wa_p, wb_p], axis=1).astype(jnp.bfloat16)   # [L, 2Dp]
    bab = jnp.concatenate([ba_p, bb_p], axis=1).astype(jnp.float32)    # [1, 2Dp]

    if C == 1:
        wc_arg = jnp.pad(wc, ((0, pad), (0, 0))).reshape(1, Dp).astype(jnp.float32)
        bc_arg = bc.reshape(1, 1).astype(jnp.float32)                  # SMEM scalar
    else:
        wc_arg = jnp.pad(wc, ((0, pad), (0, 0))).astype(jnp.bfloat16)  # [Dp, C]
        bc_arg = bc.reshape(1, C).astype(jnp.float32)

    return dict(wab=wab, bab=bab, wc=wc_arg, bc=bc_arg, L=L, D=D, Dp=Dp, C=C)


def attn_net_gated_forward(x, params, *, tile_n=2048, elementwise_dtype=None):
    """Pallas forward.  x: [N, L] (any float dtype).  Returns (A [N, C], x)."""
    N, L = x.shape
    assert L == params["L"], f"x feature dim {L} != params L {params['L']}"
    Dp, C = params["Dp"], params["C"]
    wab, bab = params["wab"], params["bab"]
    wc_arg, bc_arg = params["wc"], params["bc"]

    if elementwise_dtype is None:
        elementwise_dtype = _elementwise_dtype_for_device()

    # Token tile: multiple of 16 (bf16 sublane packing), capped at N.
    tn = _round_up(min(tile_n, N), 16)
    grid = (pl.cdiv(N, tn),)

    x_spec = pl.BlockSpec((tn, L), lambda i: (i, 0))
    wab_spec = pl.BlockSpec((L, 2 * Dp), lambda i: (0, 0))
    bab_spec = pl.BlockSpec((1, 2 * Dp), lambda i: (0, 0))
    out_spec = pl.BlockSpec((tn, C), lambda i: (i, 0))

    if C == 1:
        kernel = functools.partial(_gated_attn_kernel_c1,
                                   ew_dtype=elementwise_dtype)
        wc_spec = pl.BlockSpec((1, Dp), lambda i: (0, 0))
        bc_spec = pl.BlockSpec(memory_space=pltpu.MemorySpace.SMEM)
    else:
        kernel = functools.partial(_gated_attn_kernel_mxu,
                                   ew_dtype=elementwise_dtype)
        wc_spec = pl.BlockSpec((Dp, C), lambda i: (0, 0))
        bc_spec = pl.BlockSpec((1, C), lambda i: (0, 0))

    cost = pl.CostEstimate(
        flops=2 * N * L * (2 * Dp) + 2 * N * Dp * C,
        transcendentals=2 * N * Dp,
        bytes_accessed=(x.size * x.dtype.itemsize
                        + wab.size * wab.dtype.itemsize
                        + bab.size * bab.dtype.itemsize
                        + wc_arg.size * wc_arg.dtype.itemsize
                        + bc_arg.size * bc_arg.dtype.itemsize
                        + N * C * 4),
    )

    A = pl.pallas_call(
        kernel,
        out_shape=jax.ShapeDtypeStruct((N, C), jnp.float32),
        grid=grid,
        in_specs=[x_spec, wab_spec, bab_spec, wc_spec, bc_spec],
        out_specs=out_spec,
        compiler_params=pltpu.CompilerParams(
            dimension_semantics=("parallel",)),
        cost_estimate=cost,
    )(x, wab, bab, wc_arg, bc_arg)

    # The module returns the input unchanged as the second output.
    return A, x


def init_params(key, L=512, D=128, n_class=1):
    """Deterministic synthetic params (PyTorch Linear default-ish init)."""
    ks = jax.random.split(key, 6)

    def lin(kw, kb, fan_in, fan_out):
        bound = 1.0 / jnp.sqrt(fan_in)
        w = jax.random.uniform(kw, (fan_in, fan_out), jnp.float32, -bound, bound)
        b = jax.random.uniform(kb, (1, fan_out), jnp.float32, -bound, bound)
        return w, b

    wa, ba = lin(ks[0], ks[1], L, D)
    wb, bb = lin(ks[2], ks[3], L, D)
    wc, bc = lin(ks[4], ks[5], D, n_class)
    return wa, ba, wb, bb, wc, bc


def _reference(x, wa, ba, wb, bb, wc, bc):
    a_ref = jnp.tanh(x @ wa + ba)
    b_ref = jax.nn.sigmoid(x @ wb + bb)
    return (a_ref * b_ref) @ wc + bc


if __name__ == "__main__":
    key = jax.random.PRNGKey(0)
    k_x, k_p1, k_p2, k_p3 = jax.random.split(key, 4)

    # Small shapes consistent with the module: N tokens of dim L=512.
    N, L = 8, 512
    x = jax.random.normal(k_x, (N, L), dtype=jnp.float32)

    # bf16 matmul operands (f32 accumulation) -> loose tolerance vs f32 ref.
    TOL = dict(atol=2e-2, rtol=2e-2)

    # 1) n_class == 1, D=128 (module default) -> VPU/XLU reduction path.
    raw1 = init_params(k_p1, L=L, D=128, n_class=1)
    p1 = fuse_params(*raw1)
    A1, x1 = attn_net_gated_forward(x, p1)
    jax.block_until_ready((A1, x1))
    assert A1.shape == (N, 1)
    assert jnp.allclose(A1, _reference(x, *raw1), **TOL)
    assert jnp.array_equal(x1, x)

    # 2) n_class == 3, D=128 -> MXU projection path.
    raw2 = init_params(k_p2, L=L, D=128, n_class=3)
    p2 = fuse_params(*raw2)
    A2, x2 = attn_net_gated_forward(x, p2)
    jax.block_until_ready((A2, x2))
    assert A2.shape == (N, 3)
    assert jnp.allclose(A2, _reference(x, *raw2), **TOL)
    assert jnp.array_equal(x2, x)

    # 3) n_class == 1, D=96 (not a lane-tile multiple) -> exercises D padding.
    raw3 = init_params(k_p3, L=L, D=96, n_class=1)
    p3 = fuse_params(*raw3)
    A3, x3 = attn_net_gated_forward(x, p3)
    jax.block_until_ready((A3, x3))
    assert A3.shape == (N, 1)
    assert jnp.allclose(A3, _reference(x, *raw3), **TOL)
    assert jnp.array_equal(x3, x)

    print("KERNEL_OK")
</pallas_src>

<mosaic_0001>
module attributes {stable_mosaic.version = 11 : i64} {
  func.func @_gated_attn_kernel_c1(%arg0: i32, %arg1: memref<16x512xf32, #tpu.memory_space<vmem>>, %arg2: memref<512x256xbf16, #tpu.memory_space<vmem>>, %arg3: memref<1x256xf32, #tpu.memory_space<vmem>>, %arg4: memref<1x128xf32, #tpu.memory_space<vmem>>, %arg5: memref<1x1xf32, #tpu.memory_space<smem>>, %arg6: memref<16x1xf32, #tpu.memory_space<vmem>>) attributes {dimension_semantics = [#tpu.dimension_semantics<parallel>], iteration_bounds = array<i64: 1>, scalar_prefetch = 0 : i64, scratch_operands = 0 : i64, tpu.core_type = #tpu.core_type<tc>, window_params = [{transform_indices = @transform_0, window_bounds = array<i64: 16, 512>}, {pipeline_mode = #tpu.pipeline_mode<synchronous>, transform_indices = @transform_1, window_bounds = array<i64: 512, 256>}, {pipeline_mode = #tpu.pipeline_mode<synchronous>, transform_indices = @transform_2, window_bounds = array<i64: 1, 256>}, {pipeline_mode = #tpu.pipeline_mode<synchronous>, transform_indices = @transform_3, window_bounds = array<i64: 1, 128>}, {transform_indices = @transform_4, window_bounds = array<i64: 1, 1>}, {transform_indices = @transform_5, window_bounds = array<i64: 16, 1>}]} {
    %c0 = arith.constant 0 : index
    %c0_0 = arith.constant 0 : index
    %0 = vector.load %arg1[%c0, %c0_0] : memref<16x512xf32, #tpu.memory_space<vmem>>, vector<16x512xf32>
    %1 = arith.truncf %0 : vector<16x512xf32> to vector<16x512xbf16>
    %c0_1 = arith.constant 0 : index
    %c0_2 = arith.constant 0 : index
    %2 = vector.load %arg2[%c0_1, %c0_2] : memref<512x256xbf16, #tpu.memory_space<vmem>>, vector<512x256xbf16>
    %cst = arith.constant dense<0.000000e+00> : vector<16x256xf32>
    %3 = tpu.matmul %1, %2, %cst {dimension_numbers = #tpu.dot_dimension_numbers<[1], [0], [0], [1], [0, 0, 1, 1], [], []>} : vector<16x512xbf16>, vector<512x256xbf16>, vector<16x256xf32> -> vector<16x256xf32>
    %c0_3 = arith.constant 0 : index
    %c0_4 = arith.constant 0 : index
    %4 = vector.load %arg3[%c0_3, %c0_4] : memref<1x256xf32, #tpu.memory_space<vmem>>, vector<1x256xf32>
    %5 = vector.broadcast %4 : vector<1x256xf32> to vector<16x256xf32>
    %6 = arith.addf %3, %5 : vector<16x256xf32>
    %7 = vector.extract_strided_slice %6 {offsets = [0, 0], sizes = [16, 128], strides = [1, 1]} : vector<16x256xf32> to vector<16x128xf32>
    %8 = math.tanh %7 : vector<16x128xf32>
    %9 = vector.extract_strided_slice %6 {offsets = [0, 128], sizes = [16, 128], strides = [1, 1]} : vector<16x256xf32> to vector<16x128xf32>
    %10 = arith.negf %9 : vector<16x128xf32>
    %11 = math.exp %10 : vector<16x128xf32>
    %cst_5 = arith.constant 1.000000e+00 : f32
    %12 = vector.broadcast %cst_5 : f32 to vector<16x128xf32>
    %13 = arith.addf %12, %11 : vector<16x128xf32>
    %14 = arith.divf %12, %13 : vector<16x128xf32>
    %15 = arith.mulf %8, %14 : vector<16x128xf32>
    %c0_6 = arith.constant 0 : index
    %c0_7 = arith.constant 0 : index
    %16 = vector.load %arg4[%c0_6, %c0_7] : memref<1x128xf32, #tpu.memory_space<vmem>>, vector<1x128xf32>
    %17 = vector.broadcast %16 : vector<1x128xf32> to vector<16x128xf32>
    %18 = arith.mulf %15, %17 : vector<16x128xf32>
    %cst_8 = arith.constant dense<0.000000e+00> : vector<16xf32>
    %19 = vector.multi_reduction <add>, %18, %cst_8 [1] : vector<16x128xf32> to vector<16xf32>
    %20 = vector.shape_cast %19 : vector<16xf32> to vector<16x1xf32>
    %c0_9 = arith.constant 0 : index
    %c0_10 = arith.constant 0 : index
    %21 = memref.load %arg5[%c0_9, %c0_10] : memref<1x1xf32, #tpu.memory_space<smem>>
    %22 = vector.broadcast %21 : f32 to vector<16x1xf32>
    %23 = arith.addf %20, %22 : vector<16x1xf32>
    %c0_11 = arith.constant 0 : index
    %c0_12 = arith.constant 0 : index
    %24 = vector.load %arg6[%c0_11, %c0_12] : memref<16x1xf32, #tpu.memory_space<vmem>>, vector<16x1xf32>
    tpu.vector_store %arg6[%c0_11, %c0_12], %23 {strides = array<i32>} : memref<16x1xf32, #tpu.memory_space<vmem>>, vector<16x1xf32>,
    return
  }
  func.func @transform_0(%arg0: i32) -> (i32, i32) {
    %c0_i32 = arith.constant 0 : i32
    %c0_i32_0 = arith.constant 0 : i32
    return %arg0, %c0_i32 : i32, i32
  }
  func.func @transform_1(%arg0: i32) -> (i32, i32) {
    %c0_i32 = arith.constant 0 : i32
    %c0_i32_0 = arith.constant 0 : i32
    %c0_i32_1 = arith.constant 0 : i32
    return %c0_i32, %c0_i32_0 : i32, i32
  }
  func.func @transform_2(%arg0: i32) -> (i32, i32) {
    %c0_i32 = arith.constant 0 : i32
    %c0_i32_0 = arith.constant 0 : i32
    %c0_i32_1 = arith.constant 0 : i32
    return %c0_i32, %c0_i32_0 : i32, i32
  }
  func.func @transform_3(%arg0: i32) -> (i32, i32) {
    %c0_i32 = arith.constant 0 : i32
    %c0_i32_0 = arith.constant 0 : i32
    %c0_i32_1 = arith.constant 0 : i32
    return %c0_i32, %c0_i32_0 : i32, i32
  }
  func.func @transform_4(%arg0: i32) -> (i32, i32) {
    %c0_i32 = arith.constant 0 : i32
    %c0_i32_0 = arith.constant 0 : i32
    %c0_i32_1 = arith.constant 0 : i32
    return %c0_i32, %c0_i32_0 : i32, i32
  }
  func.func @transform_5(%arg0: i32) -> (i32, i32) {
    %c0_i32 = arith.constant 0 : i32
    %c0_i32_0 = arith.constant 0 : i32
    return %arg0, %c0_i32 : i32, i32
  }
}

</mosaic_0001>

<bundles_post_ra>
// kernel: tpu_custom_call.1
= control target key start
LH: loop header
LB: loop body
LE: loop exit
PB: predicated region body
PF: predicated region fallthrough
CT: control target
= control target key end

     0   :  { %11 = vsyncpa [#allocation4], 0  ;;  %s930_s0 = inlined_call_operand.hbm [shape: f32[8,512], index: 0, kind: input, shape index: {}]   ;;  %s931_s1 = inlined_call_operand.hbm [shape: bf16[512,256], index: 1, kind: input, shape index: {}]   ;;  %s932_s2 = inlined_call_operand.vmem [shape: f32[1,256], index: 2, kind: input, shape index: {}]   ;;  %s933_s3 = inlined_call_operand.vmem [shape: f32[1,128], index: 3, kind: input, shape index: {}]   ;;  %s934_s4 = inlined_call_operand.<no memory space> [shape: f32[1,1], index: 4, kind: input, shape index: {}]   ;;  %s935_s5 = inlined_call_operand.vmem [shape: f32[8,1], index: 5, kind: output, shape index: {}]  }
   0x1   :  { %12 = vsyncpa [#allocation6], 0 }
   0x2   :  { %17 = vsyncadd [#allocation4], 512  ;;  %s858_s18 = smov [#allocation3]   ;;  %s810_s22 = scalar_lea.hbm %s930_s0, 512 }
   0x3   :  { %s18_s19 = sshll.u32 %s858_s18, 4  ;;  %p811_p0 = scmp.ne.s32.totalorder %s930_s0, %s810_s22  ;;  %s19_s19 = int_to_ptr.vmem [resolvable:$true] %s18_s19 }
   0x4   :  { %p814_p1 = scmp.lt.u32.totalorder %s810_s22, %s930_s0 }
   0x6   :  { %p816_p2 = pnand %p814_p1, %p811_p0 }
   0x8   :  { %819 = shalt.err (!%p816_p2)
}
   0x9   :  { %s820_s27 = scalar_lea.vmem %s19_s19, 512  ;;  %s824_s28 = scalar_lea.vmem %s19_s19, 1024 }
   0xa   :  { %p821_p3 = scmp.ne.s32.totalorder %s19_s19, %s820_s27  ;;  %p825_p4 = scmp.lt.s32.totalorder %s19_s19, %s19_s19 }
   0xb   :  { %p826_p5 = scmp.lt.s32.totalorder %s824_s28, %s820_s27 }
   0xd   :  { %p827_p6 = por %p826_p5, %p825_p4 }
   0xf   :  { %p828_p7 = pnand %p827_p6, %p821_p3 }
  0x11   :  { %831 = shalt.err (!%p828_p7)
}
  0x12   :  { %s859_s29 = smov 512   ;;  %s860_s30 = smov 32  }
  0x13   :  { %24 = dma.hbm_to_vmem [thread:$0]  %s930_s0, 512, %s19_s19, [#allocation4], %s859_s29, %s859_s29, %s860_s30  }
  0x14   :  { %s861_s8 = smov [#allocation5]   ;;  %s832_s12 = scalar_lea.hbm %s931_s1, 8192 }
  0x15   :  { %s30_s9 = sshll.u32 %s861_s8, 4  ;;  %p833_p8 = scmp.ne.s32.totalorder %s931_s1, %s832_s12  ;;  %s31_s9 = int_to_ptr.vmem [resolvable:$true] %s30_s9 }
  0x16   :  { %p836_p9 = scmp.lt.u32.totalorder %s832_s12, %s931_s1 }
  0x18   :  { %p838_p10 = pnand %p836_p9, %p833_p8 }
  0x1a   :  { %841 = shalt.err (!%p838_p10)
}
  0x1b   :  { %s842_s17 = scalar_lea.vmem %s31_s9, 8192  ;;  %p847_p12 = scmp.lt.s32.totalorder %s31_s9, %s31_s9 }
  0x1c   :  { %p843_p11 = scmp.ne.s32.totalorder %s31_s9, %s842_s17  ;;  %p848_p13 = scmp.lt.s32.totalorder %s842_s17, %s842_s17 }
  0x1e   :  { %p849_p0 = por %p848_p13, %p847_p12 }
  0x20   :  { %p850_p1 = pnand %p849_p0, %p843_p11 }
  0x22   :  { %853 = shalt.err (!%p850_p1)
}
  0x23   :  { %s862_s0 = smov 128   ;;  %s863_s18 = smov 8  }
  0x24   :  { %36 = dma.hbm_to_vmem [thread:$0]  %s931_s1, 8192, %s31_s9, [#allocation6], %s862_s0, %s862_s0, %s863_s18  }
  0x25   :  { %854 = dma.done.wait [#allocation4], 1024  }
  0x26   :  { %855 = vsyncadd [#allocation4], 4294966272 }
  0x27   :  { %856 = dma.done.wait [#allocation6], 8192  }
  0x28   :  { %857 = vsyncadd [#allocation6], 4294959104  ;;  %v702_v0 = vld [vmem:[#allocation5 + $0x4] ss:$8 sps:$4 sm:$0xff]   ;;  %v706_v2 = vld [vmem:[#allocation5] ss:$8 sps:$4 sm:$0xff]  }
  0x29   :  { %v704_v1 = vld [vmem:[#allocation5 + $0x104] ss:$8 sps:$4 sm:$0xff]   ;;  %457 = vmatprep.subr.bf16.mxu1 %v702_v0  ;;  %v707_v3 = vld [vmem:[#allocation5 + $0x100] ss:$8 sps:$4 sm:$0xff]   ;;  %v708_v4 = vld [vmem:[#allocation5 + $0x14] ss:$8 sps:$4 sm:$0xff]  }
  0x2a   :  { %500 = vmatprep.subr.bf16.mxu0 %v704_v1  ;;  %458 = vmatpush1.bf16.msra.mxu1 %v706_v2  ;;  %v710_v5 = vld [vmem:[#allocation5 + $0x114] ss:$8 sps:$4 sm:$0xff]   ;;  %v712_v6 = vld [vmem:[#allocation5 + $0x10] ss:$8 sps:$4 sm:$0xff]   ;;  %v714_v8 = vld [vmem:[#allocation5 + $0x24] ss:$8 sps:$4 sm:$0xff]  }
  0x2b   :  { %501 = vmatpush1.bf16.msra.mxu0 %v707_v3  ;;  %459 = vmatprep.subr.bf16.mxu1 %v708_v4  ;;  %v713_v7 = vld [vmem:[#allocation5 + $0x110] ss:$8 sps:$4 sm:$0xff]   ;;  %v716_v9 = vld [vmem:[#allocation5 + $0x124] ss:$8 sps:$4 sm:$0xff]   ;;  %v718_v10 = vld [vmem:[#allocation5 + $0x20] ss:$8 sps:$4 sm:$0xff]  }
  0x2c   :  { %502 = vmatprep.subr.bf16.mxu0 %v710_v5  ;;  %v719_v11 = vld [vmem:[#allocation5 + $0x120] ss:$8 sps:$4 sm:$0xff]   ;;  %v720_v12 = vld [vmem:[#allocation5 + $0x34] ss:$8 sps:$4 sm:$0xff]   ;;  %v724_v14 = vld [vmem:[#allocation5 + $0x30] ss:$8 sps:$4 sm:$0xff]  }
  0x2d   :  { %v722_v13 = vld [vmem:[#allocation5 + $0x134] ss:$8 sps:$4 sm:$0xff]   ;;  %v725_v15 = vld [vmem:[#allocation5 + $0x130] ss:$8 sps:$4 sm:$0xff]   ;;  %v726_v16 = vld [vmem:[#allocation5 + $0x44] ss:$8 sps:$4 sm:$0xff]  }
  0x2e   :  { %460 = vmatpush1.bf16.msra.mxu1 %v712_v6  ;;  %v728_v17 = vld [vmem:[#allocation5 + $0x144] ss:$8 sps:$4 sm:$0xff]   ;;  %v730_v18 = vld [vmem:[#allocation5 + $0x40] ss:$8 sps:$4 sm:$0xff]   ;;  %v732_v20 = vld [vmem:[#allocation5 + $0x54] ss:$8 sps:$4 sm:$0xff]  }
  0x2f   :  { %503 = vmatpush1.bf16.msra.mxu0 %v713_v7  ;;  %461 = vmatprep.subr.bf16.mxu1 %v714_v8  ;;  %v731_v19 = vld [vmem:[#allocation5 + $0x140] ss:$8 sps:$4 sm:$0xff]   ;;  %v734_v21 = vld [vmem:[#allocation5 + $0x154] ss:$8 sps:$4 sm:$0xff]   ;;  %v736_v22 = vld [vmem:[#allocation5 + $0x50] ss:$8 sps:$4 sm:$0xff]  }
  0x30   :  { %504 = vmatprep.subr.bf16.mxu0 %v716_v9  ;;  %v737_v23 = vld [vmem:[#allocation5 + $0x150] ss:$8 sps:$4 sm:$0xff]   ;;  %v738_v24 = vld [vmem:[#allocation5 + $0x64] ss:$8 sps:$4 sm:$0xff]   ;;  %v742_v26 = vld [vmem:[#allocation5 + $0x60] ss:$8 sps:$4 sm:$0xff]  }
  0x31   :  { %v740_v25 = vld [vmem:[#allocation5 + $0x164] ss:$8 sps:$4 sm:$0xff]   ;;  %v743_v27 = vld [vmem:[#allocation5 + $0x160] ss:$8 sps:$4 sm:$0xff]   ;;  %v744_v28 = vld [vmem:[#allocation5 + $0x74] ss:$8 sps:$4 sm:$0xff]  }
  0x32   :  { %462 = vmatpush1.bf16.msra.mxu1 %v718_v10  ;;  %v746_v29 = vld [vmem:[#allocation5 + $0x174] ss:$8 sps:$4 sm:$0xff]   ;;  %v748_v30 = vld [vmem:[#allocation5 + $0x70] ss:$8 sps:$4 sm:$0xff]   ;;  %v750_v32 = vld [vmem:[#allocation5 + $0x84] ss:$8 sps:$4 sm:$0xff]  }
  0x33   :  { %505 = vmatpush1.bf16.msra.mxu0 %v719_v11  ;;  %463 = vmatprep.subr.bf16.mxu1 %v720_v12  ;;  %v749_v31 = vld [vmem:[#allocation5 + $0x170] ss:$8 sps:$4 sm:$0xff]   ;;  %v752_v33 = vld [vmem:[#allocation5 + $0x184] ss:$8 sps:$4 sm:$0xff]   ;;  %v754_v34 = vld [vmem:[#allocation5 + $0x80] ss:$8 sps:$4 sm:$0xff]   ;;  %v127_v12 = vlaneseq }
  0x34   :  { %506 = vmatprep.subr.bf16.mxu0 %v722_v13  ;;  %v755_v35 = vld [vmem:[#allocation5 + $0x180] ss:$8 sps:$4 sm:$0xff]   ;;  %v756_v36 = vld [vmem:[#allocation5 + $0x94] ss:$8 sps:$4 sm:$0xff]   ;;  %v760_v38 = vld [vmem:[#allocation5 + $0x90] ss:$8 sps:$4 sm:$0xff]  }
  0x35   :  { %v758_v37 = vld [vmem:[#allocation5 + $0x194] ss:$8 sps:$4 sm:$0xff]   ;;  %v761_v39 = vld [vmem:[#allocation5 + $0x190] ss:$8 sps:$4 sm:$0xff]   ;;  %v762_v40 = vld [vmem:[#allocation5 + $0xa4] ss:$8 sps:$4 sm:$0xff]  }
  0x36   :  { %464 = vmatpush1.bf16.msra.mxu1 %v724_v14  ;;  %v764_v41 = vld [vmem:[#allocation5 + $0x1a4] ss:$8 sps:$4 sm:$0xff]   ;;  %v766_v42 = vld [vmem:[#allocation5 + $0xa0] ss:$8 sps:$4 sm:$0xff]   ;;  %v768_v44 = vld [vmem:[#allocation5 + $0xb4] ss:$8 sps:$4 sm:$0xff]  }
  0x37   :  { %507 = vmatpush1.bf16.msra.mxu0 %v725_v15  ;;  %465 = vmatprep.subr.bf16.mxu1 %v726_v16  ;;  %v767_v43 = vld [vmem:[#allocation5 + $0x1a0] ss:$8 sps:$4 sm:$0xff]   ;;  %v770_v45 = vld [vmem:[#allocation5 + $0x1b4] ss:$8 sps:$4 sm:$0xff]   ;;  %v772_v50 = vld [vmem:[#allocation5 + $0xb0] ss:$8 sps:$4 sm:$0xff]  }
  0x38   :  { %508 = vmatprep.subr.bf16.mxu0 %v728_v17  ;;  %v50_v46 = vld [vmem:[#allocation3 + $0x8] sm:$0xff]  ;;  %v52_v48 = vld [vmem:[#allocation3 + $0x18] sm:$0xff]  ;;  %v49_v6 = vld [vmem:[#allocation3] sm:$0xff]  ;;  %v128_v13 = vshrl.u32 %v127_v12, 7  ;;  %vm576_vm0 = vcmask 7168  }
  0x39   :  { %v54_v47 = vld [vmem:[#allocation3 + $0x28] sm:$0xff]  ;;  %v56_v49 = vld [vmem:[#allocation3 + $0x38] sm:$0xff]  ;;  %v53_v7 = vld [vmem:[#allocation3 + $0x20] sm:$0xff] }
  0x3a   :  { %466 = vmatpush1.bf16.msra.mxu1 %v730_v18  ;;  %v773_v51 = vld [vmem:[#allocation5 + $0x1b0] ss:$8 sps:$4 sm:$0xff]   ;;  %v58_v52 = vpack.c.bf16 %v54_v47, %v50_v46  ;;  %v60_v53 = vpack.c.bf16 %v56_v49, %v52_v48  ;;  %v774_v54 = vld [vmem:[#allocation5 + $0xc4] ss:$8 sps:$4 sm:$0xff]   ;;  %v778_v56 = vld [vmem:[#allocation5 + $0xc0] ss:$8 sps:$4 sm:$0xff]   ;;  %v57_v10 = vpack.c.bf16 %v53_v7, %v49_v6 }
  0x3b   :  { %509 = vmatpush1.bf16.msra.mxu0 %v731_v19  ;;  %467 = vmatprep.subr.bf16.mxu1 %v732_v20  ;;  %v776_v55 = vld [vmem:[#allocation5 + $0x1c4] ss:$8 sps:$4 sm:$0xff]   ;;  %v779_v57 = vld [vmem:[#allocation5 + $0x1c0] ss:$8 sps:$4 sm:$0xff]   ;;  %v780_v58 = vld [vmem:[#allocation5 + $0xd4] ss:$8 sps:$4 sm:$0xff]  }
  0x3c   :  { %510 = vmatprep.subr.bf16.mxu0 %v734_v21  ;;  %489 = vmatprep.mubr.bf16.mxu1 %v58_v52  ;;  %v782_v59 = vld [vmem:[#allocation5 + $0x1d4] ss:$8 sps:$4 sm:$0xff]   ;;  %v784_v60 = vld [vmem:[#allocation5 + $0xd0] ss:$8 sps:$4 sm:$0xff]   ;;  %v786_v62 = vld [vmem:[#allocation5 + $0xe4] ss:$8 sps:$4 sm:$0xff]  }
  0x3d   :  { %532 = vmatprep.mubr.bf16.mxu0 %v60_v53  ;;  %v785_v61 = vld [vmem:[#allocation5 + $0x1d0] ss:$8 sps:$4 sm:$0xff]   ;;  %v788_v63 = vld [vmem:[#allocation5 + $0x1e4] ss:$8 sps:$4 sm:$0xff]   ;;  %v790_v0 = vld [vmem:[#allocation5 + $0xe0] ss:$8 sps:$4 sm:$0xff]  }
  0x3e   :  { %468 = vmatpush1.bf16.msra.mxu1 %v736_v22  ;;  %v791_v1 = vld [vmem:[#allocation5 + $0x1e0] ss:$8 sps:$4 sm:$0xff]   ;;  %v792_v2 = vld [vmem:[#allocation5 + $0xf4] ss:$8 sps:$4 sm:$0xff]   ;;  %v796_v4 = vld [vmem:[#allocation5 + $0xf0] ss:$8 sps:$4 sm:$0xff]  }
  0x3f   :  { %511 = vmatpush1.bf16.msra.mxu0 %v737_v23  ;;  %469 = vmatprep.subr.bf16.mxu1 %v738_v24  ;;  %v794_v3 = vld [vmem:[#allocation5 + $0x1f4] ss:$8 sps:$4 sm:$0xff]   ;;  %v797_v5 = vld [vmem:[#allocation5 + $0x1f0] ss:$8 sps:$4 sm:$0xff]   ;;  %v129_v14 = vsub.s32 0, %v128_v13  ;;  %v133_v16 = vsub.s32 1, %v128_v13 }
  0x40   :  { %512 = vmatprep.subr.bf16.mxu0 %v740_v25  ;;  %v51_v8 = vld [vmem:[#allocation3 + $0x10] sm:$0xff]  ;;  %v125_v15 = vld [vmem:[%s932_s2] sm:$0x3] }
  0x41   :  { %v55_v9 = vld [vmem:[#allocation3 + $0x30] sm:$0xff]  ;;  %v130_v17 = vrot.slane %v125_v15, %v129_v14  ;;  %v134_v18 = vrot.slane %v125_v15, %v133_v16 }
  0x42   :  { %470 = vmatpush1.bf16.msra.mxu1 %v742_v26  ;;  %v59_v11 = vpack.c.bf16 %v55_v9, %v51_v8 }
  0x43   :  { %513 = vmatpush1.bf16.msra.mxu0 %v743_v27  ;;  %471 = vmatprep.subr.bf16.mxu1 %v744_v28 }
  0x44   :  { %514 = vmatprep.subr.bf16.mxu0 %v746_v29 }
  0x46   :  { %472 = vmatpush1.bf16.msra.mxu1 %v748_v30 }
  0x47   :  { %515 = vmatpush1.bf16.msra.mxu0 %v749_v31  ;;  %473 = vmatprep.subr.bf16.mxu1 %v750_v32 }
  0x48   :  { %516 = vmatprep.subr.bf16.mxu0 %v752_v33 }
  0x4a   :  { %474 = vmatpush1.bf16.msra.mxu1 %v754_v34 }
  0x4b   :  { %517 = vmatpush1.bf16.msra.mxu0 %v755_v35  ;;  %475 = vmatprep.subr.bf16.mxu1 %v756_v36 }
  0x4c   :  { %518 = vmatprep.subr.bf16.mxu0 %v758_v37 }
  0x4e   :  { %476 = vmatpush1.bf16.msra.mxu1 %v760_v38 }
  0x4f   :  { %519 = vmatpush1.bf16.msra.mxu0 %v761_v39  ;;  %477 = vmatprep.subr.bf16.mxu1 %v762_v40 }
  0x50   :  { %520 = vmatprep.subr.bf16.mxu0 %v764_v41 }
  0x52   :  { %478 = vmatpush1.bf16.msra.mxu1 %v766_v42 }
  0x53   :  { %521 = vmatpush1.bf16.msra.mxu0 %v767_v43  ;;  %479 = vmatprep.subr.bf16.mxu1 %v768_v44  ;;  %v687_v43 = vld [vmem:[%s933_s3] ss:$0 sm:$0xff] }
  0x54   :  { %522 = vmatprep.subr.bf16.mxu0 %v770_v45 }
  0x56   :  { %480 = vmatpush1.bf16.msra.mxu1 %v772_v50  ;;  %v573_v50 = vstv %s934_s4 }
  0x57   :  { %523 = vmatpush1.bf16.msra.mxu0 %v773_v51  ;;  %481 = vmatprep.subr.bf16.mxu1 %v774_v54 }
  0x58   :  { %524 = vmatprep.subr.bf16.mxu0 %v776_v55 }
  0x5a   :  { %482 = vmatpush1.bf16.msra.mxu1 %v778_v56 }
  0x5b   :  { %525 = vmatpush1.bf16.msra.mxu0 %v779_v57  ;;  %483 = vmatprep.subr.bf16.mxu1 %v780_v58 }
  0x5c   :  { %526 = vmatprep.subr.bf16.mxu0 %v782_v59 }
  0x5e   :  { %484 = vmatpush1.bf16.msra.mxu1 %v784_v60 }
  0x5f   :  { %527 = vmatpush1.bf16.msra.mxu0 %v785_v61  ;;  %485 = vmatprep.subr.bf16.mxu1 %v786_v62 }
  0x60   :  { %528 = vmatprep.subr.bf16.mxu0 %v788_v63 }
  0x62   :  { %486 = vmatpush1.bf16.msra.mxu1 %v790_v0 }
  0x63   :  { %529 = vmatpush1.bf16.msra.mxu0 %v791_v1  ;;  %487 = vmatprep.subr.bf16.mxu1 %v792_v2 }
  0x64   :  { %530 = vmatprep.subr.bf16.mxu0 %v794_v3 }
  0x66   :  { %488 = vmatpush1.bf16.msra.mxu1 %v796_v4 }
  0x67   :  { %531 = vmatpush1.bf16.msra.mxu0 %v797_v5 }
  0x69   :  { %490 = vmatmul.mubr.bf16.vlgmr.msra.gmra.mrb[0].mxu1 %v57_v10 }
  0x6a   :  { %533 = vmatmul.mubr.bf16.vlgmr.msra.gmra.mrb[0].mxu0 %v59_v11 }
 0x13c   :  { %v491_v19 = vpop.f32.mrb[0].mxu1 }
 0x13d   :  { %v534_v20 = vpop.f32.mrb[0].mxu0  ;;  %v492_v21 = vadd.f32 %v491_v19, %v130_v17  ;;  %v493_v22 = vpop.f32.mrb[1].mxu1 }
 0x13e   :  { %v536_v23 = vpop.f32.mrb[1].mxu0  ;;  %v494_v24 = vadd.f32 %v493_v22, %v134_v18  ;;  %v495_v25 = vpop.f32.mrb[2].mxu1 }
 0x13f   :  { %v538_v26 = vpop.f32.mrb[2].mxu0  ;;  %v535_v27 = vadd.f32 %v534_v20, %v492_v21  ;;  %v496_v28 = vadd.f32 %v495_v25, %v130_v17  ;;  %v497_v29 = vpop.f32.mrb[3].mxu1 }
 0x140   :  { %v540_v30 = vpop.f32.mrb[3].mxu0  ;;  %v537_v31 = vadd.f32 %v536_v23, %v494_v24  ;;  %v498_v32 = vadd.f32 %v497_v29, %v134_v18 }
 0x141   :  { %v539_v33 = vadd.f32 %v538_v26, %v496_v28 }
 0x142   :  { %v685_v34 = vmul.f32 -1.442695, %v537_v31  ;;  %v541_v35 = vadd.f32 %v540_v30, %v498_v32 }
 0x144   :  { %798 = vpow2.f32 %v685_v34  ;;  %v686_v36 = vmul.f32 -1.442695, %v541_v35 }
 0x146   :  { %800 = vpow2.f32 %v686_v36 }
 0x147   :  { %802 = vtanh.f32 %v535_v27 }
 0x14e   :  { %v799_v37 = vpop.eup %798 }
 0x14f   :  { %v551_v38 = vadd.f32 1.0, %v799_v37 }
 0x150   :  { %v801_v39 = vpop.eup %800 }
 0x151   :  { %804 = vrcp.f32 %v551_v38  ;;  %v552_v40 = vadd.f32 1.0, %v801_v39  ;;  %v803_v41 = vpop.eup %802 }
 0x152   :  { %806 = vtanh.f32 %v539_v33 }
 0x153   :  { %808 = vrcp.f32 %v552_v40 }
 0x15b   :  { %v805_v42 = vpop.eup %804 }
 0x15c   :  { %v807_v44 = vpop.eup %806  ;;  %v557_v45 = vmul.f32 %v805_v42, %v803_v41 }
 0x15d   :  { %v809_v46 = vpop.eup %808 }
 0x15e   :  { %v566_v47 = vmul.f32 %v687_v43, %v557_v45  ;;  %v558_v48 = vmul.f32 %v809_v46, %v807_v44 }
 0x160   :  { %568 = vadd.xlane.f32.xlu0 %v566_v47  ;;  %v567_v49 = vmul.f32 %v687_v43, %v558_v48 }
 0x164   :  { %570 = vadd.xlane.f32.xlu0 %v567_v49 }
 0x1ed   :  { %v569_v51 = vpop.xlane.xlu0 %568 }
 0x1ee   :  { %v574_v52 = vadd.f32 %v573_v50, %v569_v51 }
 0x1f0   :  { %577 = vst.msk [vmem:[#allocation7] sm:$0xff] %vm576_vm0, %v574_v52 }
 0x1f1   :  { %v571_v53 = vpop.xlane.xlu0 %570 }
 0x1f7   :  { %v608_v54 = vld [vmem:[#allocation7] sm:$0xff] }
 0x1f8   :  { %609 = vst [vmem:[%s935_s5] sm:$0xff] %v608_v54 }
 0x1f9   :  { %615 = vsyncpa [#allocation4], 1 }
 0x1fa   :  { %616 = vsyncpa [#allocation6], 1 }

</bundles_post_ra>
